<compile_context>
chip_gen: v5e
topology: v5e:2x2
jax: 0.10.0
libtpu: 0.0.40
codegen_flags: <defaults>
</compile_context>

<pallas_src>
import functools
import math

import jax
import jax.numpy as jnp
from jax.experimental import pallas as pl
from jax.experimental.pallas import tpu as pltpu


def _mse_onehot_kernel(x_ref, t_ref, pack_ref, lcls_ref, out_ref, acc_ref, *,
                       inner_steps, tile_s, num_tiles, valid_super_rows,
                       needs_edge, mm_dtype):
    """One grid step over a lane-dense (tile_s, W) packed tile.

    x_ref    : (tile_s, W)  packed inputs, native dtype, W = G*C lanes
    t_ref    : (tile_s, G)  int32 class ids (one per original row)
    pack_ref : (G, W)       constant 0/1 lane-expansion matrix (mm_dtype), resident
    lcls_ref : (1, W)       constant f32 "column % C" per lane, resident
    out_ref  : (1, acc_rows, W) per-slice partial sums, written once per slice
    acc_ref  : (acc_rows, W) f32 accumulator, resident across the inner axis
    """
    slice_id = pl.program_id(0)      # "parallel" axis (megacore split)
    step = pl.program_id(1)          # "arbitrary" reduction axis

    @pl.when(step == 0)
    def _init():
        acc_ref[...] = jnp.zeros_like(acc_ref)

    # Stream native dtype from HBM; upcast on the VPU.
    x = x_ref[...].astype(jnp.float32)                              # (tile_s, W)

    # Lane-expand targets G -> W on the otherwise-idle MXU:
    #   t_exp[s, j] == target of original row (j // C), exactly (0/1 matrix,
    #   integer class ids <= 256 are exact in bf16, f32 accumulate).
    t_exp = jnp.dot(t_ref[...].astype(mm_dtype), pack_ref[...],
                    preferred_element_type=jnp.float32)             # (tile_s, W)

    # onehot[s, j] == 1  iff  (j % C) == t_exp[s, j]; folded straight into the
    # difference (no bool->f32 materialization, no int casts).
    match = t_exp == lcls_ref[...]
    diff = jnp.where(match, x - 1.0, x)
    sq = diff * diff                                                # (tile_s, W)

    acc_rows = acc_ref.shape[0]
    w = sq.shape[-1]

    def _reduce(v):
        # (tile_s, W) -> (acc_rows, W).  Sublane-group split along the tiled
        # second-minor dim (multiples of 8): pure VPU adds, no cross-lane work.
        if acc_rows == 8 and tile_s > 8:
            return v.reshape(tile_s // 8, 8, w).sum(axis=0)
        if acc_rows == 8:                      # tile_s == 8
            return v
        # Single full-dim tile whose row count isn't a multiple of 8 (runs once).
        return jnp.sum(v, axis=0, keepdims=True)

    if needs_edge:
        tile_idx = slice_id * inner_steps + step
        is_interior = tile_idx < num_tiles - 1

        @pl.when(is_interior)
        def _acc_interior():
            acc_ref[...] += _reduce(sq)

        # Only the last (possibly ragged) real tile and the clamped "virtual"
        # tile of the megacore split take the masked path; rows past the end of
        # the packed array (stale/garbage VMEM) are dropped by the select.
        @pl.when(jnp.logical_not(is_interior))
        def _acc_edge():
            row = (jax.lax.broadcasted_iota(jnp.int32, sq.shape, 0)
                   + tile_idx * tile_s)
            acc_ref[...] += _reduce(jnp.where(row < valid_super_rows, sq, 0.0))
    else:
        acc_ref[...] += _reduce(sq)

    @pl.when(step == inner_steps - 1)
    def _finalize():
        out_ref[...] = acc_ref[...][None]


def mse_loss_onehot(inputs, target, *, tile_super_rows=None):
    """loss = mean((inputs - onehot(target, C))**2); inputs (N, C), target (N,) ints."""
    n, c = inputs.shape
    target = target.reshape(-1).astype(jnp.int32)

    # ---- lane-dense packing: G original rows per super-row, W = G*C lanes.
    # G must be a multiple of g0 = 128 / gcd(C, 128) so W is a multiple of 128.
    g0 = 128 // math.gcd(c, 128)
    w0 = c * g0
    widen = max(1, -(-512 // w0))        # prefer >= 512 lanes for dense DMA/vst
    g_pref = g0 * widen
    if n % g_pref == 0 or n % g0 != 0:
        g = g_pref                       # zero-copy if divisible, else fallback
    else:
        g = g0                           # minimal lane-dense width, zero-copy
    w = c * g

    n_main = (n // g) * g                # rows handled by the kernel
    s_total = n_main // g                # packed super-rows

    # ---- <G-row tail: tiny pure-JAX epilogue (no full-array pad / concat).
    if n_main < n:
        x_tail = inputs[n_main:].astype(jnp.float32)
        oh_tail = jax.nn.one_hot(target[n_main:], c, dtype=jnp.float32)
        tail_sum = jnp.sum((x_tail - oh_tail) ** 2)
    else:
        tail_sum = jnp.float32(0.0)

    inv_count = 1.0 / float(n * c)
    if s_total == 0:                     # batch smaller than one super-row
        return tail_sum * inv_count

    if n_main == n:
        # Contiguous reshape: pure bitcast, the kernel streams the original array.
        x_packed = inputs.reshape(s_total, w)
        t_packed = target.reshape(s_total, g)
    else:
        # N not divisible by any legal packing factor: one-time prefix repack
        # (one extra HBM read+write).  Still cheaper and simpler than the old
        # full-array pad + sentinel-class target concat.
        x_packed = inputs[:n_main].reshape(s_total, w)
        t_packed = target[:n_main].reshape(s_total, g)

    # ---- tile sizing: ~2 MiB of input per block (per-step overhead <<1%),
    # leaving room for the MXU lane-expansion temporary inside the 32 MiB
    # scoped VMEM budget (also safe on v7x's 64 MiB/TC).
    itemsize = jnp.dtype(inputs.dtype).itemsize
    if tile_super_rows is None:
        tile_s = ((2 << 20) // (w * itemsize)) // 8 * 8
        tile_s = max(8, min(2048, tile_s))
    else:
        tile_s = max(1, int(tile_super_rows))
    if tile_s >= s_total:
        tile_s = s_total                 # full-dim block is always legal
    else:
        tile_s = max(8, (tile_s // 8) * 8)

    num_tiles = -(-s_total // tile_s)
    # Megacore split: always 2 slices when there are >= 2 tiles.  Odd counts get
    # a clamped "virtual" tile whose contribution is masked in-kernel, so v7x
    # never silently degrades to a single TensorCore.
    p_slices = 2 if num_tiles >= 2 else 1
    inner_steps = -(-num_tiles // p_slices)
    needs_edge = (p_slices * inner_steps * tile_s != s_total)
    acc_rows = 8 if tile_s % 8 == 0 else 1
    mm_dtype = jnp.bfloat16 if c <= 256 else jnp.float32   # exact for class ids

    # ---- constants, hoisted out of the kernel (VMEM-resident, one DMA total).
    j = jnp.arange(w, dtype=jnp.int32)
    in_pack = ((j[None, :] // c)
               == jnp.arange(g, dtype=jnp.int32)[:, None]).astype(mm_dtype)  # (G, W)
    lane_class = (j % c).astype(jnp.float32)[None, :]                        # (1, W)

    last_block = num_tiles - 1
    clamp = p_slices * inner_steps > num_tiles

    def data_map(p, s):
        idx = p * inner_steps + s
        if clamp:
            idx = jnp.minimum(idx, last_block)   # virtual tiles re-read the last block
        return (idx, 0)

    kernel = functools.partial(
        _mse_onehot_kernel,
        inner_steps=inner_steps,
        tile_s=tile_s,
        num_tiles=num_tiles,
        valid_super_rows=s_total,
        needs_edge=needs_edge,
        mm_dtype=mm_dtype,
    )

    partials = pl.pallas_call(
        kernel,
        out_shape=jax.ShapeDtypeStruct((p_slices, acc_rows, w), jnp.float32),
        grid_spec=pltpu.PrefetchScalarGridSpec(
            num_scalar_prefetch=0,
            grid=(p_slices, inner_steps),
            in_specs=[
                pl.BlockSpec((tile_s, w), data_map),
                pl.BlockSpec((tile_s, g), data_map),
                pl.BlockSpec((g, w), lambda p, s: (0, 0)),   # resident constant
                pl.BlockSpec((1, w), lambda p, s: (0, 0)),   # resident constant
            ],
            out_specs=pl.BlockSpec((1, acc_rows, w), lambda p, s: (p, 0, 0)),
            scratch_shapes=[pltpu.VMEM((acc_rows, w), jnp.float32)],
        ),
        compiler_params=pltpu.CompilerParams(
            dimension_semantics=("parallel", "arbitrary"),
            vmem_limit_bytes=32 * 1024 * 1024,
        ),
    )(x_packed, t_packed, in_pack, lane_class)

    return (jnp.sum(partials) + tail_sum) * inv_count


if __name__ == "__main__":
    key = jax.random.PRNGKey(0)
    k1, k2, k3, k4 = jax.random.split(key, 4)

    def _ref(x, t, c):
        oh = jax.nn.one_hot(t, c, dtype=jnp.float32)
        return jnp.mean((x.astype(jnp.float32) - oh) ** 2)

    C = 10  # SVHN-style classification logits

    # 1) Auto tiling: single full-dim block (15 super-rows) + 40-row tail epilogue.
    N1 = 1000
    x1 = jax.random.normal(k1, (N1, C), dtype=jnp.float32)
    t1 = jax.random.randint(k2, (N1,), 0, C, dtype=jnp.int32)
    out1 = jax.block_until_ready(mse_loss_onehot(x1, t1))
    ref1 = _ref(x1, t1, C)
    assert jnp.allclose(out1, ref1, rtol=1e-5, atol=1e-6), (out1, ref1)

    # 2) Multi-tile, odd tile count (megacore virtual tile), ragged last tile,
    #    plus a 13-row tail epilogue.  (Tiny tile only to exercise the paths.)
    N2 = 4109
    x2 = jax.random.normal(k3, (N2, C), dtype=jnp.float32)
    t2 = jax.random.randint(k4, (N2,), 0, C, dtype=jnp.int32)
    out2 = jax.block_until_ready(mse_loss_onehot(x2, t2, tile_super_rows=24))
    ref2 = _ref(x2, t2, C)
    assert jnp.allclose(out2, ref2, rtol=1e-5, atol=1e-6), (out2, ref2)

    # 3) Aligned batch (zero-copy reshape), bf16 inputs, 2-way slice split.
    N3 = 2048
    x3 = jax.random.normal(k1, (N3, C), dtype=jnp.bfloat16)
    t3 = jax.random.randint(k2, (N3,), 0, C, dtype=jnp.int32)
    out3 = jax.block_until_ready(mse_loss_onehot(x3, t3, tile_super_rows=16))
    ref3 = _ref(x3, t3, C)
    assert jnp.allclose(out3, ref3, rtol=1e-5, atol=1e-6), (out3, ref3)

    print("KERNEL_OK")
</pallas_src>

<mosaic_0001>
module attributes {stable_mosaic.version = 11 : i64} {
  func.func @_mse_onehot_kernel(%arg0: i32, %arg1: i32, %arg2: memref<15x640xf32, #tpu.memory_space<vmem>>, %arg3: memref<15x64xi32, #tpu.memory_space<vmem>>, %arg4: memref<64x640xbf16, #tpu.memory_space<vmem>>, %arg5: memref<1x640xf32, #tpu.memory_space<vmem>>, %arg6: memref<1x1x640xf32, #tpu.memory_space<vmem>>, %arg7: memref<1x640xf32, #tpu.memory_space<vmem>>) attributes {dimension_semantics = [#tpu.dimension_semantics<parallel>, #tpu.dimension_semantics<arbitrary>], iteration_bounds = array<i64: 1, 1>, scalar_prefetch = 0 : i64, scratch_operands = 1 : i64, tpu.core_type = #tpu.core_type<tc>, window_params = [{transform_indices = @transform_0, window_bounds = array<i64: 15, 640>}, {transform_indices = @transform_1, window_bounds = array<i64: 15, 64>}, {pipeline_mode = #tpu.pipeline_mode<synchronous>, transform_indices = @transform_2, window_bounds = array<i64: 64, 640>}, {pipeline_mode = #tpu.pipeline_mode<synchronous>, transform_indices = @transform_3, window_bounds = array<i64: 1, 640>}, {transform_indices = @transform_4, window_bounds = array<i64: 1, 1, 640>}]} {
    %c0_i32 = arith.constant 0 : i32
    %0 = arith.cmpi eq, %arg1, %c0_i32 : i32
    %1 = arith.extui %0 : i1 to i32
    %c0_i32_0 = arith.constant 0 : i32
    %2 = arith.cmpi ne, %1, %c0_i32_0 : i32
    scf.if %2 {
      %cst_16 = arith.constant 0.000000e+00 : f32
      %23 = vector.broadcast %cst_16 : f32 to vector<1x640xf32>
      %c0_17 = arith.constant 0 : index
      %c0_18 = arith.constant 0 : index
      %24 = vector.load %arg7[%c0_17, %c0_18] : memref<1x640xf32, #tpu.memory_space<vmem>>, vector<1x640xf32>
      tpu.vector_store %arg7[%c0_17, %c0_18], %23 {strides = array<i32>} : memref<1x640xf32, #tpu.memory_space<vmem>>, vector<1x640xf32>,
    } else {
    }
    %c0 = arith.constant 0 : index
    %c0_1 = arith.constant 0 : index
    %3 = vector.load %arg2[%c0, %c0_1] : memref<15x640xf32, #tpu.memory_space<vmem>>, vector<15x640xf32>
    %c0_2 = arith.constant 0 : index
    %c0_3 = arith.constant 0 : index
    %4 = vector.load %arg3[%c0_2, %c0_3] : memref<15x64xi32, #tpu.memory_space<vmem>>, vector<15x64xi32>
    %5 = arith.sitofp %4 : vector<15x64xi32> to vector<15x64xbf16>
    %c0_4 = arith.constant 0 : index
    %c0_5 = arith.constant 0 : index
    %6 = vector.load %arg4[%c0_4, %c0_5] : memref<64x640xbf16, #tpu.memory_space<vmem>>, vector<64x640xbf16>
    %cst = arith.constant dense<0.000000e+00> : vector<15x640xf32>
    %7 = tpu.matmul %5, %6, %cst {dimension_numbers = #tpu.dot_dimension_numbers<[1], [0], [0], [1], [0, 0, 1, 1], [], []>} : vector<15x64xbf16>, vector<64x640xbf16>, vector<15x640xf32> -> vector<15x640xf32>
    %c0_6 = arith.constant 0 : index
    %c0_7 = arith.constant 0 : index
    %8 = vector.load %arg5[%c0_6, %c0_7] : memref<1x640xf32, #tpu.memory_space<vmem>>, vector<1x640xf32>
    %9 = vector.broadcast %8 : vector<1x640xf32> to vector<15x640xf32>
    %10 = arith.cmpf oeq, %7, %9 : vector<15x640xf32>
    %cst_8 = arith.constant 1.000000e+00 : f32
    %11 = vector.broadcast %cst_8 : f32 to vector<15x640xf32>
    %12 = arith.subf %3, %11 : vector<15x640xf32>
    %13 = arith.select %10, %12, %3 : vector<15x640xi1>, vector<15x640xf32>
    %14 = arith.mulf %13, %13 : vector<15x640xf32>
    %c0_9 = arith.constant 0 : index
    %c0_10 = arith.constant 0 : index
    %15 = vector.load %arg7[%c0_9, %c0_10] : memref<1x640xf32, #tpu.memory_space<vmem>>, vector<1x640xf32>
    %cst_11 = arith.constant dense<0.000000e+00> : vector<640xf32>
    %16 = vector.multi_reduction <add>, %14, %cst_11 [0] : vector<15x640xf32> to vector<640xf32>
    %17 = vector.shape_cast %16 : vector<640xf32> to vector<1x640xf32>
    %18 = arith.addf %15, %17 : vector<1x640xf32>
    %c0_12 = arith.constant 0 : index
    %c0_13 = arith.constant 0 : index
    %19 = vector.load %arg7[%c0_12, %c0_13] : memref<1x640xf32, #tpu.memory_space<vmem>>, vector<1x640xf32>
    tpu.vector_store %arg7[%c0_12, %c0_13], %18 {strides = array<i32>} : memref<1x640xf32, #tpu.memory_space<vmem>>, vector<1x640xf32>,
    %c0_i32_14 = arith.constant 0 : i32
    %20 = arith.cmpi eq, %arg1, %c0_i32_14 : i32
    %21 = arith.extui %20 : i1 to i32
    %c0_i32_15 = arith.constant 0 : i32
    %22 = arith.cmpi ne, %21, %c0_i32_15 : i32
    scf.if %22 {
      %c0_16 = arith.constant 0 : index
      %c0_17 = arith.constant 0 : index
      %23 = vector.load %arg7[%c0_16, %c0_17] : memref<1x640xf32, #tpu.memory_space<vmem>>, vector<1x640xf32>
      %24 = vector.shape_cast %23 : vector<1x640xf32> to vector<1x1x640xf32>
      %c0_18 = arith.constant 0 : index
      %c0_19 = arith.constant 0 : index
      %c0_20 = arith.constant 0 : index
      %25 = vector.load %arg6[%c0_18, %c0_19, %c0_20] : memref<1x1x640xf32, #tpu.memory_space<vmem>>, vector<1x1x640xf32>
      tpu.vector_store %arg6[%c0_18, %c0_19, %c0_20], %24 {strides = array<i32>} : memref<1x1x640xf32, #tpu.memory_space<vmem>>, vector<1x1x640xf32>,
    } else {
    }
    return
  }
  func.func @transform_0(%arg0: i32, %arg1: i32) -> (i32, i32) {
    %c1_i32 = arith.constant 1 : i32
    %0 = arith.muli %arg0, %c1_i32 : i32
    %1 = arith.addi %0, %arg1 : i32
    %c0_i32 = arith.constant 0 : i32
    %c0_i32_0 = arith.constant 0 : i32
    return %1, %c0_i32 : i32, i32
  }
  func.func @transform_1(%arg0: i32, %arg1: i32) -> (i32, i32) {
    %c1_i32 = arith.constant 1 : i32
    %0 = arith.muli %arg0, %c1_i32 : i32
    %1 = arith.addi %0, %arg1 : i32
    %c0_i32 = arith.constant 0 : i32
    %c0_i32_0 = arith.constant 0 : i32
    return %1, %c0_i32 : i32, i32
  }
  func.func @transform_2(%arg0: i32, %arg1: i32) -> (i32, i32) {
    %c0_i32 = arith.constant 0 : i32
    %c0_i32_0 = arith.constant 0 : i32
    %c0_i32_1 = arith.constant 0 : i32
    return %c0_i32, %c0_i32_0 : i32, i32
  }
  func.func @transform_3(%arg0: i32, %arg1: i32) -> (i32, i32) {
    %c0_i32 = arith.constant 0 : i32
    %c0_i32_0 = arith.constant 0 : i32
    %c0_i32_1 = arith.constant 0 : i32
    return %c0_i32, %c0_i32_0 : i32, i32
  }
  func.func @transform_4(%arg0: i32, %arg1: i32) -> (i32, i32, i32) {
    %c0_i32 = arith.constant 0 : i32
    %c0_i32_0 = arith.constant 0 : i32
    %c0_i32_1 = arith.constant 0 : i32
    return %arg0, %c0_i32, %c0_i32_0 : i32, i32, i32
  }
}

</mosaic_0001>

<bundles_post_ra>
// kernel: tpu_custom_call.1
= control target key start
LH: loop header
LB: loop body
LE: loop exit
PB: predicated region body
PF: predicated region fallthrough
CT: control target
= control target key end

     0   :  { %9 = vsyncpa [#allocation4], 0  ;;  %s795_s0 = inlined_call_operand.hbm [shape: f32[15,640], index: 0, kind: input, shape index: {}]   ;;  %s796_s1 = inlined_call_operand.hbm [shape: s32[15,64], index: 1, kind: input, shape index: {}]   ;;  %s797_s2 = inlined_call_operand.hbm [shape: bf16[64,640], index: 2, kind: input, shape index: {}]   ;;  %s798_s3 = inlined_call_operand.hbm [shape: f32[1,640], index: 3, kind: input, shape index: {}]   ;;  %s799_s4 = inlined_call_operand.hbm [shape: f32[1,1,640], index: 4, kind: output, shape index: {}]  }
   0x1   :  { %10 = vsyncpa [#allocation7], 0 }
   0x2   :  { %11 = vsyncpa [#allocation10], 0  ;;  %s39_s17 = sshll.u32 %s796_s1, 4  ;;  %s40_s17 = int_to_ptr.hbm [resolvable:$true] %s39_s17 }
   0x3   :  { %12 = vsyncpa [#allocation5], 0  ;;  %s716_s18 = smov [#allocation6]   ;;  %s22_s22 = sshll.u32 %s795_s0, 4  ;;  %s23_s22 = int_to_ptr.hbm [resolvable:$true] %s22_s22 }
   0x4   :  { %s41_s19 = sshll.u32 %s716_s18, 4  ;;  %s717_s23 = smov 128   ;;  %s42_s19 = int_to_ptr.vmem [resolvable:$true] %s41_s19 }
   0x5   :  { %s718_s24 = smov 8   ;;  %s719_s25 = smov [#allocation3]  }
   0x6   :  { %47 = dma.hbm_to_vmem [thread:$0]  %s40_s17, 256, %s42_s19, [#allocation7], %s717_s23, %s717_s23, %s718_s24  }
   0x7   :  { %s24_s26 = sshll.u32 %s719_s25, 4  ;;  %s720_s27 = smov 640   ;;  %s25_s26 = int_to_ptr.vmem [resolvable:$true] %s24_s26 }
   0x8   :  { %s721_s28 = smov 40   ;;  %s52_s30 = sshll.u32 %s797_s2, 4  ;;  %s53_s30 = int_to_ptr.hbm [resolvable:$true] %s52_s30 }
   0x9   :  { %30 = dma.hbm_to_vmem [thread:$0]  %s23_s22, 1280, %s25_s26, [#allocation4], %s720_s27, %s720_s27, %s721_s28  }
   0xa   :  { %s722_s5 = smov [#allocation8]   ;;  %s66_s8 = sshll.u32 %s798_s3, 4  ;;  %s67_s8 = int_to_ptr.hbm [resolvable:$true] %s66_s8 }
   0xb   :  { %s54_s6 = sshll.u32 %s722_s5, 4  ;;  %s723_s9 = smov 320   ;;  %s55_s6 = int_to_ptr.vmem [resolvable:$true] %s54_s6 }
   0xc   :  { %s724_s10 = smov 20   ;;  %s725_s11 = smov [#allocation9]  }
   0xd   :  { %60 = dma.hbm_to_vmem [thread:$0]  %s53_s30, 2560, %s55_s6, [#allocation7], %s723_s9, %s723_s9, %s724_s10  }
   0xe   :  { %s68_s12 = sshll.u32 %s725_s11, 4  ;;  %s69_s12 = int_to_ptr.vmem [resolvable:$true] %s68_s12 }
   0xf   :  { %71 = dma.hbm_to_vmem [thread:$0]  %s67_s8, 80, %s69_s12, [#allocation10]  }
  0x10   :  { %708 = dma.done.wait [#allocation4], 1280  }
  0x11   :  { %709 = vsyncadd [#allocation4], 4294966016 }
  0x12   :  { %710 = dma.done.wait [#allocation7], 2816  }
  0x13   :  { %711 = vsyncadd [#allocation7], 4294964480 }
  0x14   :  { %712 = dma.done.wait [#allocation10], 80  }
  0x15   :  { %713 = vsyncadd [#allocation10], 4294967216  ;;  %v523_v0 = vld [vmem:[#allocation8 + $0x78] sm:$0xf]  ;;  %v573_v1 = vld [vmem:[#allocation8 + $0x88] sm:$0xf0] }
  0x16   :  { %v571_v2 = vld [vmem:[#allocation8 + $0x7c] sm:$0xf]  ;;  %v524_v3 = vor.u32 %v573_v1, %v523_v0  ;;  %v525_v4 = vld [vmem:[#allocation8 + $0x8c] sm:$0xf0]  ;;  %v531_v5 = vld [vmem:[#allocation8 + $0x80] sm:$0xf] }
  0x17   :  { %v574_v6 = vld [vmem:[#allocation8 + $0x90] sm:$0xf0]  ;;  %v528_v7 = vor.u32 %v571_v2, %v525_v4  ;;  %v572_v9 = vld [vmem:[#allocation8 + $0x84] sm:$0xf]  ;;  %v533_v10 = vld [vmem:[#allocation8 + $0x94] sm:$0xf0] }
  0x18   :  { %v532_v8 = vor.u32 %v574_v6, %v531_v5  ;;  %v503_v11 = vld [vmem:[#allocation8 + $0x50] sm:$0xf]  ;;  %253 = vmatpush.bf16.msra.mxu0 %v524_v3  ;;  %v536_v12 = vor.u32 %v572_v9, %v533_v10  ;;  %v568_v13 = vld [vmem:[#allocation8 + $0x60] sm:$0xf0]  ;;  %v566_v14 = vld [vmem:[#allocation8 + $0x54] sm:$0xf] }
  0x19   :  { %v505_v15 = vld [vmem:[#allocation8 + $0x64] sm:$0xf0]  ;;  %267 = vmatpush.bf16.msra.mxu1 %v528_v7  ;;  %v504_v16 = vor.u32 %v568_v13, %v503_v11  ;;  %v511_v18 = vld [vmem:[#allocation8 + $0x58] sm:$0xf]  ;;  %v569_v19 = vld [vmem:[#allocation8 + $0x68] sm:$0xf0] }
  0x1a   :  { %281 = vmatpush.bf16.msra.mxu2 %v532_v8  ;;  %v508_v17 = vor.u32 %v566_v14, %v505_v15  ;;  %v567_v20 = vld [vmem:[#allocation8 + $0x5c] sm:$0xf]  ;;  %295 = vmatpush.bf16.msra.mxu3 %v536_v12  ;;  %v512_v21 = vor.u32 %v569_v19, %v511_v18  ;;  %v513_v22 = vld [vmem:[#allocation8 + $0x6c] sm:$0xf0]  ;;  %v483_v23 = vld [vmem:[#allocation8 + $0x28] sm:$0xf] }
  0x1b   :  { %v563_v24 = vld [vmem:[#allocation8 + $0x38] sm:$0xf0]  ;;  %v516_v25 = vor.u32 %v567_v20, %v513_v22  ;;  %v561_v26 = vld [vmem:[#allocation8 + $0x2c] sm:$0xf]  ;;  %v485_v27 = vld [vmem:[#allocation8 + $0x3c] sm:$0xf0] }
  0x1c   :  { %v491_v28 = vld [vmem:[#allocation8 + $0x30] sm:$0xf]  ;;  %254 = vmatpush.bf16.msra.mxu0 %v504_v16  ;;  %v484_v29 = vor.u32 %v563_v24, %v483_v23  ;;  %v564_v30 = vld [vmem:[#allocation8 + $0x40] sm:$0xf0]  ;;  %v562_v31 = vld [vmem:[#allocation8 + $0x34] sm:$0xf]  ;;  %v488_v33 = vor.u32 %v561_v26, %v485_v27 }
  0x1d   :  { %v493_v32 = vld [vmem:[#allocation8 + $0x44] sm:$0xf0]  ;;  %268 = vmatpush.bf16.msra.mxu1 %v508_v17  ;;  %v492_v34 = vor.u32 %v564_v30, %v491_v28  ;;  %v463_v35 = vld [vmem:[#allocation8] sm:$0xf]  ;;  %v558_v36 = vld [vmem:[#allocation8 + $0x10] sm:$0xf0]  ;;  %v97_v17 = vlaneseq }
  0x1e   :  { %282 = vmatpush.bf16.msra.mxu2 %v512_v21  ;;  %v556_v37 = vld [vmem:[#allocation8 + $0x4] sm:$0xf]  ;;  %296 = vmatpush.bf16.msra.mxu3 %v516_v25  ;;  %v496_v38 = vor.u32 %v562_v31, %v493_v32  ;;  %v465_v39 = vld [vmem:[#allocation8 + $0x14] sm:$0xf0]  ;;  %v471_v40 = vld [vmem:[#allocation8 + $0x8] sm:$0xf]  ;;  %v464_v45 = vor.u32 %v558_v36, %v463_v35 }
  0x1f   :  { %v559_v41 = vld [vmem:[#allocation8 + $0x18] sm:$0xf0]  ;;  %v557_v42 = vld [vmem:[#allocation8 + $0xc] sm:$0xf]  ;;  %v473_v43 = vld [vmem:[#allocation8 + $0x1c] sm:$0xf0]  ;;  %v468_v50 = vor.u32 %v556_v37, %v465_v39 }
  0x20   :  { %v112_v44 = vld [vmem:[#allocation6] sm:$0xff]  ;;  %255 = vmatpush.bf16.msra.mxu0 %v484_v29  ;;  %v113_v46 = vld [vmem:[#allocation6 + $0x8] sm:$0x7f]  ;;  %v539_v48 = vld [vmem:[#allocation8 + $0x88] sm:$0xf]  ;;  %v472_v51 = vor.u32 %v559_v41, %v471_v40  ;;  %v476_v53 = vor.u32 %v557_v42, %v473_v43  ;;  %vm245_vm0 = vcmask 523264  }
  0x21   :  { %v114_v47 = vcvt.s32.f32 %v112_v44  ;;  %v575_v49 = vld [vmem:[#allocation8 + $0x98] sm:$0xf0]  ;;  %269 = vmatpush.bf16.msra.mxu1 %v488_v33  ;;  %v115_v52 = vcvt.s32.f32 %v113_v46  ;;  %v519_v56 = vld [vmem:[#allocation8 + $0x60] sm:$0xf]  ;;  %v570_v57 = vld [vmem:[#allocation8 + $0x70] sm:$0xf0] }
  0x22   :  { %283 = vmatpush.bf16.msra.mxu2 %v492_v34  ;;  %297 = vmatpush.bf16.msra.mxu3 %v496_v38  ;;  %v540_v54 = vor.u32 %v575_v49, %v539_v48  ;;  %v520_v58 = vor.u32 %v570_v57, %v519_v56  ;;  %v499_v59 = vld [vmem:[#allocation8 + $0x38] sm:$0xf]  ;;  %v565_v60 = vld [vmem:[#allocation8 + $0x48] sm:$0xf0]  ;;  %v479_v62 = vld [vmem:[#allocation8 + $0x10] sm:$0xf] }
  0x23   :  { %v116_v55 = vpack.c.bf16 %v115_v52, %v114_v47  ;;  %v500_v61 = vor.u32 %v565_v60, %v499_v59  ;;  %v560_v63 = vld [vmem:[#allocation8 + $0x20] sm:$0xf0]  ;;  %v103_v3 = vld [vmem:[#allocation3 + $0x8] sm:$0xff]  ;;  %v108_v8 = vld [vmem:[#allocation3 + $0x30] sm:$0x7f]  ;;  %vm776_vm3 = vcmp.lt.s32.totalorder %v97_v17, 640 }
  0x24   :  { %256 = vmatpush.bf16.msra.mxu0 %v464_v45  ;;  %v480_v0 = vor.u32 %v560_v63, %v479_v62  ;;  %v770_v2 = vld [vmem:[#allocation9] sm:$0x1f]  ;;  %v107_v6 = vld [vmem:[#allocation3 + $0x28] sm:$0x7f]  ;;  %v547_v7 = vadd.f32 -1.0, %v103_v3  ;;  %v104_v11 = vld [vmem:[#allocation3 + $0x10] sm:$0xff] }
  0x25   :  { %270 = vmatpush.bf16.msra.mxu1 %v468_v50  ;;  %v322_v5 = vperm.slane %v770_v2, 1  ;;  %v102_v9 = vld [vmem:[#allocation3] sm:$0xff]  ;;  %v321_v10 = vperm.slane %v770_v2, 0  ;;  %v105_v12 = vld [vmem:[#allocation3 + $0x18] sm:$0xff]  ;;  %v551_v13 = vadd.f32 -1.0, %v107_v6  ;;  %v323_v15 = vperm.slane %v770_v2, 2 }
  0x26   :  { %284 = vmatpush.bf16.msra.mxu2 %v472_v51  ;;  %298 = vmatpush.bf16.msra.mxu3 %v476_v53  ;;  %v552_v16 = vadd.f32 -1.0, %v108_v8  ;;  %v546_v18 = vadd.f32 -1.0, %v102_v9  ;;  %v324_v21 = vperm.slane %v770_v2, 3  ;;  %v548_v23 = vadd.f32 -1.0, %v104_v11  ;;  %v109_v28 = vld [vmem:[#allocation3 + $0x38] sm:$0x7f] }
  0x27   :  { %541 = vmatmul.msk.bf16.vlgmr.msra.gmra.mxu0 %vm245_vm0, %v116_v55  ;;  %v549_v24 = vadd.f32 -1.0, %v105_v12  ;;  %vm372_vm5 = vcmask 1046528   ;;  %v110_v31 = vld [vmem:[#allocation3 + $0x40] sm:$0x7f]  ;;  %v726_v34 = vmov 0.0   ;;  %v553_v36 = vadd.f32 -1.0, %v109_v28 }
  0x28   :  { %309 = vmatpush.bf16.msrb.mxu0 %v540_v54  ;;  %542 = vmatmul.msk.bf16.vlgmr.msra.gmra.mxu1 %vm245_vm0, %v116_v55  ;;  %101 = vst.msk [vmem:[#allocation2] sm:$0x1f] %vm776_vm3, %v726_v34  ;;  %v554_v39 = vadd.f32 -1.0, %v110_v31  ;;  %v106_v53 = vld [vmem:[#allocation3 + $0x20] sm:$0xff]  ;;  %v325_v54 = vperm.slane %v770_v2, 4  ;;  %vm422_vm13 = vcmask 1040384  }
  0x29   :  { %543 = vmatmul.msk.bf16.vlgmr.msra.gmra.mxu2 %vm245_vm0, %v116_v55  ;;  %544 = vmatmul.msk.bf16.vlgmr.msra.gmra.mxu3 %vm245_vm0, %v116_v55  ;;  %v111_v57 = vld [vmem:[#allocation3 + $0x48] sm:$0x7f]  ;;  %v550_v62 = vadd.f32 -1.0, %v106_v53  ;;  %vm424_vm14 = vcmask 1041408   ;;  %vm426_vm15 = vcmask 1043459   ;;  %s727_s2 = smov [#allocation11]  }
  0x2a   :  { %s447_s3 = sshll.u32 %s727_s2, 4  ;;  %s449_s15 = sshll.u32 %s799_s4, 4  ;;  %s448_s3 = int_to_ptr.vmem [resolvable:$true] %s447_s3  ;;  %s450_s15 = int_to_ptr.hbm [resolvable:$true] %s449_s15 }
  0x2c   :  { %310 = vmatpush.bf16.msrb.mxu0 %v520_v58 }
  0x30   :  { %311 = vmatpush.bf16.msrb.mxu0 %v500_v61 }
  0x34   :  { %312 = vmatpush.bf16.msrb.mxu0 %v480_v0  ;;  %v555_v0 = vadd.f32 -1.0, %v111_v57 }
  0x37   :  { %545 = vmatmul.msk.bf16.vlgmr.msrb.gmra.mxu0 %vm245_vm0, %v116_v55  ;;  %vm428_vm0 = vcmask 1042432  }
  0xa4   :  { %v258_v1 = vpop.f32.mrf.mxu0 }
  0xa5   :  { %v272_v4 = vpop.f32.mrf.mxu1  ;;  %vm331_vm4 = vcmp.eq.f32.partialorder %v258_v1, %v321_v10 }
  0xa6   :  { %vm332_vm1 = vcmp.eq.f32.partialorder %v272_v4, %v322_v5  ;;  %v351_v35 = vsel %vm331_vm4, %v546_v18, %v102_v9 }
  0xa7   :  { %v352_v19 = vsel %vm332_vm1, %v547_v7, %v103_v3  ;;  %v361_v43 = vmul.f32 %v351_v35, %v351_v35 }
  0xa8   :  { %v362_v29 = vmul.f32 %v352_v19, %v352_v19 }
  0xac   :  { %v286_v14 = vpop.f32.mrf.mxu2  ;;  %v300_v20 = vpop.f32.mrf.mxu3 }
  0xad   :  { %v260_v22 = vpop.f32.mrf.mxu0  ;;  %v274_v25 = vpop.f32.mrf.mxu1  ;;  %vm333_vm7 = vcmp.eq.f32.partialorder %v286_v14, %v323_v15  ;;  %vm334_vm8 = vcmp.eq.f32.partialorder %v300_v20, %v324_v21 }
  0xae   :  { %vm336_vm2 = vcmp.eq.f32.partialorder %v260_v22, %v321_v10  ;;  %vm337_vm6 = vcmp.eq.f32.partialorder %v274_v25, %v322_v5  ;;  %v353_v37 = vsel %vm333_vm7, %v548_v23, %v104_v11  ;;  %v354_v40 = vsel %vm334_vm8, %v549_v24, %v105_v12 }
  0xaf   :  { %v356_v27 = vsel %vm336_vm2, %v551_v13, %v107_v6  ;;  %v357_v30 = vsel %vm337_vm6, %v552_v16, %v108_v8  ;;  %v363_v47 = vmul.f32 %v353_v37, %v353_v37  ;;  %v364_v50 = vmul.f32 %v354_v40, %v354_v40 }
  0xb0   :  { %v366_v32 = vmul.f32 %v356_v27, %v356_v27  ;;  %v367_v33 = vmul.f32 %v357_v30, %v357_v30 }
  0xb2   :  { %v381_v38 = vsel %vm372_vm5, %v367_v33, 0.0  ;;  %v373_v44 = vsel %vm372_vm5, %v366_v32, 0.0 }
  0xb3   :  { %v382_v41 = vadd.f32 %v381_v38, %v362_v29  ;;  %v374_v55 = vadd.f32 %v373_v44, %v361_v43 }
  0xb4   :  { %v288_v42 = vpop.f32.mrf.mxu2  ;;  %v302_v45 = vpop.f32.mrf.mxu3 }
  0xb5   :  { %vm338_vm9 = vcmp.eq.f32.partialorder %v288_v42, %v323_v15  ;;  %v314_v46 = vpop.f32.mrf.mxu0  ;;  %v383_v48 = vrot.slane %v382_v41, 4  ;;  %vm339_vm10 = vcmp.eq.f32.partialorder %v302_v45, %v324_v21  ;;  %v375_v1 = vrot.slane %v374_v55, 4  ;;  %v371_v42 = vld [vmem:[#allocation2] sm:$0x1f] }
  0xb6   :  { %v358_v49 = vsel %vm338_vm9, %v553_v36, %v109_v28  ;;  %v359_v52 = vsel %vm339_vm10, %v554_v39, %v110_v31  ;;  %vm335_vm11 = vcmp.eq.f32.partialorder %v314_v46, %v325_v54 }
  0xb7   :  { %v368_v51 = vmul.f32 %v358_v49, %v358_v49  ;;  %v369_v56 = vmul.f32 %v359_v52, %v359_v52  ;;  %v384_v59 = vadd.f32 %v383_v48, %v382_v41  ;;  %v355_v2 = vsel %vm335_vm11, %v550_v62, %v106_v53 }
  0xb8   :  { %v376_v10 = vadd.f32 %v375_v1, %v374_v55  ;;  %v365_v14 = vmul.f32 %v355_v2, %v355_v2 }
  0xb9   :  { %v389_v58 = vsel %vm372_vm5, %v368_v51, 0.0  ;;  %v397_v61 = vsel %vm372_vm5, %v369_v56, 0.0  ;;  %v385_v6 = vrot.slane %v384_v59, 2 }
  0xba   :  { %v390_v60 = vadd.f32 %v389_v58, %v363_v47  ;;  %v398_v63 = vadd.f32 %v397_v61, %v364_v50  ;;  %v377_v19 = vrot.slane %v376_v10, 2 }
  0xbb   :  { %v386_v15 = vadd.f32 %v385_v6, %v384_v59 }
  0xbc   :  { %v391_v3 = vrot.slane %v390_v60, 4  ;;  %v399_v4 = vrot.slane %v398_v63, 4  ;;  %v378_v25 = vadd.f32 %v377_v19, %v376_v10 }
  0xbd   :  { %v316_v5 = vpop.f32.mrf.mxu0  ;;  %v387_v22 = vrot.slane %v386_v15, 1 }
  0xbe   :  { %v392_v7 = vadd.f32 %v391_v3, %v390_v60  ;;  %vm340_vm12 = vcmp.eq.f32.partialorder %v316_v5, %v325_v54  ;;  %v400_v8 = vadd.f32 %v399_v4, %v398_v63  ;;  %v379_v32 = vrot.slane %v378_v25, 1 }
  0xbf   :  { %v360_v9 = vsel %vm340_vm12, %v555_v0, %v111_v57  ;;  %v388_v29 = vadd.f32 %v387_v22, %v386_v15 }
  0xc0   :  { %v393_v11 = vrot.slane %v392_v7, 2  ;;  %v370_v12 = vmul.f32 %v360_v9, %v360_v9  ;;  %v401_v13 = vrot.slane %v400_v8, 2  ;;  %v380_v38 = vadd.f32 %v379_v32, %v378_v25 }
  0xc1   :  { %v418_v35 = vrot.slane %v388_v29, 7 }
  0xc2   :  { %v405_v16 = vsel %vm372_vm5, %v370_v12, 0.0  ;;  %v394_v17 = vadd.f32 %v393_v11, %v392_v7  ;;  %v402_v20 = vadd.f32 %v401_v13, %v400_v8 }
  0xc3   :  { %v406_v18 = vadd.f32 %v405_v16, %v365_v14  ;;  %v423_v41 = vsel %vm422_vm13, %v380_v38, %v418_v35 }
  0xc4   :  { %v395_v23 = vrot.slane %v394_v17, 1  ;;  %v403_v27 = vrot.slane %v402_v20, 1 }
  0xc5   :  { %v407_v21 = vrot.slane %v406_v18, 4 }
  0xc6   :  { %v396_v30 = vadd.f32 %v395_v23, %v394_v17  ;;  %v404_v33 = vadd.f32 %v403_v27, %v402_v20 }
  0xc7   :  { %v408_v24 = vadd.f32 %v407_v21, %v406_v18 }
  0xc8   :  { %v419_v36 = vrot.slane %v396_v30, 6  ;;  %v420_v39 = vrot.slane %v404_v33, 5 }
  0xc9   :  { %v409_v28 = vrot.slane %v408_v24, 2 }
  0xca   :  { %v425_v43 = vsel %vm424_vm14, %v423_v41, %v419_v36 }
  0xcb   :  { %v410_v31 = vadd.f32 %v409_v28, %v408_v24 }
  0xcd   :  { %v411_v34 = vrot.slane %v410_v31, 1 }
  0xcf   :  { %v412_v37 = vadd.f32 %v411_v34, %v410_v31 }
  0xd1   :  { %v421_v40 = vrot.slane %v412_v37, 4 }
  0xd3   :  { %v427_v44 = vsel %vm426_vm15, %v420_v39, %v421_v40 }
  0xd4   :  { %v429_v45 = vsel %vm428_vm0, %v425_v43, %v427_v44 }
  0xd5   :  { %v431_v46 = vadd.f32 %v429_v45, %v371_v42 }
  0xd7   :  { %436 = vst.msk [vmem:[#allocation2] sm:$0x1f] %vm776_vm3, %v431_v46 }
  0xde   :  { %v440_v47 = vld [vmem:[#allocation2] sm:$0x1f] }
  0xdf   :  { %441 = vst.msk [vmem:[#allocation11] sm:$0x1f] %vm776_vm3, %v440_v47 }
  0xe0   :  { %452 = dma.vmem_to_hbm [thread:$0]  %s448_s3, 80, %s450_s15, [#allocation5]  }
  0xe1   :  { %714 = dma.done.wait [#allocation5], 80  }
  0xe2   :  { %715 = vsyncadd [#allocation5], 4294967216 }
  0xe3   :  { %457 = vsyncpa [#allocation4], 1 }
  0xe4   :  { %458 = vsyncpa [#allocation7], 1 }
  0xe5   :  { %459 = vsyncpa [#allocation10], 1 }
  0xe6   :  { %460 = vsyncpa [#allocation5], 1 }

</bundles_post_ra>
